<compile_context>
chip_gen: v6e
topology: v6e:2x2x1
jax: 0.10.0
libtpu: 0.0.40
codegen_flags: <defaults>
</compile_context>

<pallas_src>
import functools

import jax
import jax.numpy as jnp
from jax.experimental import pallas as pl
from jax.experimental.pallas import tpu as pltpu


def _dc_kernel(w_ref, cm_ref, b_ref, x_ref, o_ref, wm_ref, *, H, W):
    # w_ref : (9, C, 1)    f32  per-tap, per-channel filter weights
    # cm_ref: (2, HW)      f32  column-edge masks: [j != 0, j != W-1]
    # b_ref : (1, HW)      f32  bias pre-broadcast to one flattened spatial row
    # x_ref : (bblk, C, HW)     batch block of flattened input planes (any dtype)
    # o_ref : (bblk, HW)        dense output block
    # wm_ref: (9, C, HW)   f32  VMEM scratch: hoisted weight * edge-mask planes
    bblk, C, HW = x_ref.shape

    # ---- Hoisted per-tap weight*mask planes, built once per grid step ------
    # (amortized over bblk images; row masks from an in-kernel iota, column
    # masks from the tiny cm input -> no full-plane mask HBM/VMEM footprint).
    pos = jax.lax.broadcasted_iota(jnp.int32, (1, HW), 1)
    ones = jnp.ones((1, HW), dtype=jnp.float32)
    row_ok = {-1: (pos >= W).astype(jnp.float32),
              0: ones,
              1: (pos < (H - 1) * W).astype(jnp.float32)}
    col_ok = {-1: cm_ref[0:1, :], 0: ones, 1: cm_ref[1:2, :]}
    for t in range(9):
        dh, dw = t // 3 - 1, t % 3 - 1
        wm_ref[t] = w_ref[t] * (row_ok[dh] * col_ok[dw])       # (C,1)*(1,HW)->(C,HW)

    bias = b_ref[...]                                          # (1, HW)
    shifts = tuple((-((t // 3 - 1) * W + (t % 3 - 1))) % HW for t in range(9))

    def per_image(b):
        xb = x_ref[b].astype(jnp.float32)                      # (C, HW): one load/image
        acc = wm_ref[4] * xb                                   # center tap (no roll)
        for t in (0, 1, 2, 3, 5, 6, 7, 8):
            rolled = pltpu.roll(xb, shift=shifts[t], axis=1)   # XLU lane rotation
            acc = acc + wm_ref[t] * rolled                     # 1 mul + 1 add / tap
        row = jnp.sum(acc, axis=0, keepdims=True) + bias       # sublane reduce over C
        o_ref[pl.ds(b, 1), :] = row.astype(o_ref.dtype)

    if bblk <= 8:                          # small block: full static unroll
        for b in range(bblk):
            per_image(b)
    else:                                  # large block: bounded live ranges
        def body(b, carry):
            per_image(b)
            return carry
        jax.lax.fori_loop(0, bblk, body, 0)


def _round_up(v, m):
    return -(-v // m) * m


def _tile_plan(N, C, HW, in_itemsize, out_itemsize):
    """Pick the batch-block size from a generation-aware VMEM budget."""
    try:
        kind = jax.devices()[0].device_kind.lower()
    except Exception:
        kind = ""
    if "v7" in kind:                 # 64 MiB VMEM total, 2 TensorCores
        budget, cap, multicore = 22 << 20, 48 << 20, True
    elif "v5" in kind:               # single TC, conservative scoped default
        budget, cap, multicore = 12 << 20, 100 << 20, False
    else:                            # v6e / unknown: 128 MiB physical, 1 TC
        budget, cap, multicore = 24 << 20, 100 << 20, False

    Cp = _round_up(C, 8)
    HWp = _round_up(HW, 128)
    fixed = 9 * Cp * HWp * 4                 # wm scratch (not double-buffered)
    fixed += 2 * 9 * Cp * 128 * 4            # wtap input (double-buffered)
    fixed += 2 * 2 * 8 * HWp * 4             # bias + colmask rows (double-buffered)

    def resident(blk):
        x_tile = blk * Cp * HWp * in_itemsize
        o_tile = _round_up(blk, 8) * HWp * out_itemsize
        return fixed + 2 * (x_tile + o_tile)

    bblk = 1
    for blk in range(1, N + 1):
        if resident(blk) <= budget:
            bblk = blk
        else:
            break
    # TODO(synk): add a channel/lane grid-axis fallback for single images whose
    # C*HW tile alone exceeds the VMEM budget (resident(1) > budget).

    if multicore and N > 1:
        # v7x: both TensorCores share the parallel grid axis -> keep an even
        # (>= 2) number of roughly balanced steps.
        steps = max(2, -(-N // bblk))
        if steps % 2:
            steps += 1
        steps = min(steps, N)
        bblk = -(-N // steps)
    nsteps = -(-N // bblk)

    vmem_limit = int(min(max(2 * resident(bblk) + (8 << 20), 32 << 20), cap))
    return bblk, nsteps, vmem_limit


def dc_forward(x, w, b):
    """x: (N, I*O, H, W), w: (O, I, 3, 3), b: (O,) -> (N, 1, H, W)."""
    N, Cin, H, W = x.shape
    O, I = int(w.shape[0]), int(w.shape[1])
    assert Cin == I * O, "grouped conv requires C_in == groups * (in_ch / group)"
    # Same (accidental) bias broadcast rule as the PyTorch module.
    assert O in (1, W), "bias of shape (O,) only broadcasts if O == 1 or O == W"
    HW = H * W
    out_dtype = jnp.result_type(x.dtype, w.dtype, b.dtype)

    # Collapse grouped conv + channel-sum: input channel c = g*O + j uses w[j, g].
    wch = jnp.transpose(w, (1, 0, 2, 3)).reshape(Cin, 9).astype(jnp.float32)
    wtap = wch.T.reshape(9, Cin, 1)                                    # (9, C, 1)

    # Column-edge masks (left/right) in flattened layout; row masks come from
    # an in-kernel iota, so there is no 9-plane mask stream.
    col = jnp.arange(HW, dtype=jnp.int32) % W
    colmask = jnp.stack([col != 0, col != W - 1], 0).astype(jnp.float32)  # (2, HW)

    # torch bias broadcast: (O,) against the W axis.
    brow = jnp.broadcast_to(b.astype(jnp.float32), (H, W)).reshape(1, HW)

    # Free contiguous reshape; keep the caller's dtype (upcast happens in-kernel).
    xf = x.reshape(N, Cin, HW)

    bblk, nsteps, vmem_limit = _tile_plan(N, Cin, HW, x.dtype.itemsize,
                                          jnp.dtype(out_dtype).itemsize)

    out = pl.pallas_call(
        functools.partial(_dc_kernel, H=H, W=W),
        out_shape=jax.ShapeDtypeStruct((nsteps, bblk, HW), out_dtype),
        grid_spec=pltpu.PrefetchScalarGridSpec(
            num_scalar_prefetch=0,
            grid=(nsteps,),
            in_specs=[
                pl.BlockSpec((9, Cin, 1), lambda n: (0, 0, 0)),      # taps
                pl.BlockSpec((2, HW), lambda n: (0, 0)),             # column masks
                pl.BlockSpec((1, HW), lambda n: (0, 0)),             # bias row
                pl.BlockSpec((bblk, Cin, HW), lambda n: (n, 0, 0)),  # input block
            ],
            out_specs=pl.BlockSpec((None, bblk, HW), lambda n: (n, 0, 0)),
            scratch_shapes=[pltpu.VMEM((9, Cin, HW), jnp.float32)],
        ),
        compiler_params=pltpu.CompilerParams(
            dimension_semantics=("parallel",),
            vmem_limit_bytes=vmem_limit),
    )(wtap, colmask, brow, xf)

    out = out.reshape(nsteps * bblk, HW)[:N]
    return out.reshape(N, 1, H, W)


def dc_reference(x, w, b):
    """Pure-JAX replica of the PyTorch forward (grouped conv + sum + bias)."""
    I = w.shape[1]
    wt = jnp.transpose(w, (1, 0, 2, 3))  # (I, O, 3, 3), OIHW with groups=I
    c1 = jax.lax.conv_general_dilated(
        x, wt, window_strides=(1, 1), padding=((1, 1), (1, 1)),
        dimension_numbers=("NCHW", "OIHW", "NCHW"),
        feature_group_count=I)
    return c1.sum(axis=1, keepdims=True) + b


if __name__ == "__main__":
    # h ~ nn.Conv2d(I=4, O=1, kernel=3): weight (1, 4, 3, 3), bias (1,)
    N, I, O, H, W = 2, 4, 1, 16, 16
    Cin = I * O

    key = jax.random.PRNGKey(0)
    kx, kw, kb = jax.random.split(key, 3)
    x = jax.random.normal(kx, (N, Cin, H, W), dtype=jnp.float32)
    w = jax.random.normal(kw, (O, I, 3, 3), dtype=jnp.float32)
    b = jax.random.normal(kb, (O,), dtype=jnp.float32)

    out = jax.block_until_ready(dc_forward(x, w, b))
    ref = dc_reference(x, w, b)

    assert out.shape == (N, 1, H, W), out.shape
    assert jnp.allclose(out, ref, atol=1e-4, rtol=1e-4), float(jnp.max(jnp.abs(out - ref)))
    print("KERNEL_OK")
</pallas_src>

<mosaic_0001>
module attributes {stable_mosaic.version = 11 : i64} {
  func.func @_dc_kernel(%arg0: i32, %arg1: memref<9x4x1xf32, #tpu.memory_space<vmem>>, %arg2: memref<2x256xf32, #tpu.memory_space<vmem>>, %arg3: memref<1x256xf32, #tpu.memory_space<vmem>>, %arg4: memref<2x4x256xf32, #tpu.memory_space<vmem>>, %arg5: memref<1x2x256xf32, #tpu.memory_space<vmem>>, %arg6: memref<9x4x256xf32, #tpu.memory_space<vmem>>) attributes {dimension_semantics = [#tpu.dimension_semantics<parallel>], iteration_bounds = array<i64: 1>, scalar_prefetch = 0 : i64, scratch_operands = 1 : i64, tpu.core_type = #tpu.core_type<tc>, window_params = [{pipeline_mode = #tpu.pipeline_mode<synchronous>, transform_indices = @transform_0, window_bounds = array<i64: 9, 4, 1>}, {pipeline_mode = #tpu.pipeline_mode<synchronous>, transform_indices = @transform_1, window_bounds = array<i64: 2, 256>}, {pipeline_mode = #tpu.pipeline_mode<synchronous>, transform_indices = @transform_2, window_bounds = array<i64: 1, 256>}, {transform_indices = @transform_3, window_bounds = array<i64: 2, 4, 256>}, {transform_indices = @transform_4, window_bounds = array<i64: 1, 2, 256>}]} {
    %0 = tpu.iota {dimensions = array<i32: 1>} : vector<1x256xi32>
    %cst = arith.constant 1.000000e+00 : f32
    %1 = vector.broadcast %cst : f32 to vector<1x256xf32>
    %c16_i32 = arith.constant 16 : i32
    %2 = vector.broadcast %c16_i32 : i32 to vector<1x256xi32>
    %3 = arith.cmpi sge, %0, %2 : vector<1x256xi32>
    %4 = arith.extui %3 : vector<1x256xi1> to vector<1x256xi32>
    %5 = arith.sitofp %4 : vector<1x256xi32> to vector<1x256xf32>
    %c240_i32 = arith.constant 240 : i32
    %6 = vector.broadcast %c240_i32 : i32 to vector<1x256xi32>
    %7 = arith.cmpi slt, %0, %6 : vector<1x256xi32>
    %8 = arith.extui %7 : vector<1x256xi1> to vector<1x256xi32>
    %9 = arith.sitofp %8 : vector<1x256xi32> to vector<1x256xf32>
    %c0 = arith.constant 0 : index
    %c0_0 = arith.constant 0 : index
    %10 = vector.load %arg2[%c0, %c0_0] : memref<2x256xf32, #tpu.memory_space<vmem>>, vector<1x256xf32>
    %c1 = arith.constant 1 : index
    %c0_1 = arith.constant 0 : index
    %11 = vector.load %arg2[%c1, %c0_1] : memref<2x256xf32, #tpu.memory_space<vmem>>, vector<1x256xf32>
    %c0_2 = arith.constant 0 : index
    %c0_3 = arith.constant 0 : index
    %c0_4 = arith.constant 0 : index
    %12 = vector.load %arg1[%c0_2, %c0_3, %c0_4] : memref<9x4x1xf32, #tpu.memory_space<vmem>>, vector<1x4x1xf32>
    %13 = vector.shape_cast %12 : vector<1x4x1xf32> to vector<4x1xf32>
    %14 = arith.mulf %5, %10 : vector<1x256xf32>
    %15 = vector.broadcast %13 : vector<4x1xf32> to vector<4x256xf32>
    %16 = vector.broadcast %14 : vector<1x256xf32> to vector<4x256xf32>
    %17 = arith.mulf %15, %16 : vector<4x256xf32>
    %c0_5 = arith.constant 0 : index
    %c0_6 = arith.constant 0 : index
    %c0_7 = arith.constant 0 : index
    %18 = vector.load %arg6[%c0_5, %c0_6, %c0_7] : memref<9x4x256xf32, #tpu.memory_space<vmem>>, vector<1x4x256xf32>
    %19 = vector.shape_cast %18 : vector<1x4x256xf32> to vector<4x256xf32>
    %20 = vector.shape_cast %17 : vector<4x256xf32> to vector<1x4x256xf32>
    tpu.vector_store %arg6[%c0_5, %c0_6, %c0_7], %20 {strides = array<i32>} : memref<9x4x256xf32, #tpu.memory_space<vmem>>, vector<1x4x256xf32>,
    %c1_8 = arith.constant 1 : index
    %c0_9 = arith.constant 0 : index
    %c0_10 = arith.constant 0 : index
    %21 = vector.load %arg1[%c1_8, %c0_9, %c0_10] : memref<9x4x1xf32, #tpu.memory_space<vmem>>, vector<1x4x1xf32>
    %22 = vector.shape_cast %21 : vector<1x4x1xf32> to vector<4x1xf32>
    %23 = arith.mulf %5, %1 : vector<1x256xf32>
    %24 = vector.broadcast %22 : vector<4x1xf32> to vector<4x256xf32>
    %25 = vector.broadcast %23 : vector<1x256xf32> to vector<4x256xf32>
    %26 = arith.mulf %24, %25 : vector<4x256xf32>
    %c1_11 = arith.constant 1 : index
    %c0_12 = arith.constant 0 : index
    %c0_13 = arith.constant 0 : index
    %27 = vector.load %arg6[%c1_11, %c0_12, %c0_13] : memref<9x4x256xf32, #tpu.memory_space<vmem>>, vector<1x4x256xf32>
    %28 = vector.shape_cast %27 : vector<1x4x256xf32> to vector<4x256xf32>
    %29 = vector.shape_cast %26 : vector<4x256xf32> to vector<1x4x256xf32>
    tpu.vector_store %arg6[%c1_11, %c0_12, %c0_13], %29 {strides = array<i32>} : memref<9x4x256xf32, #tpu.memory_space<vmem>>, vector<1x4x256xf32>,
    %c2 = arith.constant 2 : index
    %c0_14 = arith.constant 0 : index
    %c0_15 = arith.constant 0 : index
    %30 = vector.load %arg1[%c2, %c0_14, %c0_15] : memref<9x4x1xf32, #tpu.memory_space<vmem>>, vector<1x4x1xf32>
    %31 = vector.shape_cast %30 : vector<1x4x1xf32> to vector<4x1xf32>
    %32 = arith.mulf %5, %11 : vector<1x256xf32>
    %33 = vector.broadcast %31 : vector<4x1xf32> to vector<4x256xf32>
    %34 = vector.broadcast %32 : vector<1x256xf32> to vector<4x256xf32>
    %35 = arith.mulf %33, %34 : vector<4x256xf32>
    %c2_16 = arith.constant 2 : index
    %c0_17 = arith.constant 0 : index
    %c0_18 = arith.constant 0 : index
    %36 = vector.load %arg6[%c2_16, %c0_17, %c0_18] : memref<9x4x256xf32, #tpu.memory_space<vmem>>, vector<1x4x256xf32>
    %37 = vector.shape_cast %36 : vector<1x4x256xf32> to vector<4x256xf32>
    %38 = vector.shape_cast %35 : vector<4x256xf32> to vector<1x4x256xf32>
    tpu.vector_store %arg6[%c2_16, %c0_17, %c0_18], %38 {strides = array<i32>} : memref<9x4x256xf32, #tpu.memory_space<vmem>>, vector<1x4x256xf32>,
    %c3 = arith.constant 3 : index
    %c0_19 = arith.constant 0 : index
    %c0_20 = arith.constant 0 : index
    %39 = vector.load %arg1[%c3, %c0_19, %c0_20] : memref<9x4x1xf32, #tpu.memory_space<vmem>>, vector<1x4x1xf32>
    %40 = vector.shape_cast %39 : vector<1x4x1xf32> to vector<4x1xf32>
    %41 = arith.mulf %1, %10 : vector<1x256xf32>
    %42 = vector.broadcast %40 : vector<4x1xf32> to vector<4x256xf32>
    %43 = vector.broadcast %41 : vector<1x256xf32> to vector<4x256xf32>
    %44 = arith.mulf %42, %43 : vector<4x256xf32>
    %c3_21 = arith.constant 3 : index
    %c0_22 = arith.constant 0 : index
    %c0_23 = arith.constant 0 : index
    %45 = vector.load %arg6[%c3_21, %c0_22, %c0_23] : memref<9x4x256xf32, #tpu.memory_space<vmem>>, vector<1x4x256xf32>
    %46 = vector.shape_cast %45 : vector<1x4x256xf32> to vector<4x256xf32>
    %47 = vector.shape_cast %44 : vector<4x256xf32> to vector<1x4x256xf32>
    tpu.vector_store %arg6[%c3_21, %c0_22, %c0_23], %47 {strides = array<i32>} : memref<9x4x256xf32, #tpu.memory_space<vmem>>, vector<1x4x256xf32>,
    %c4 = arith.constant 4 : index
    %c0_24 = arith.constant 0 : index
    %c0_25 = arith.constant 0 : index
    %48 = vector.load %arg1[%c4, %c0_24, %c0_25] : memref<9x4x1xf32, #tpu.memory_space<vmem>>, vector<1x4x1xf32>
    %49 = vector.shape_cast %48 : vector<1x4x1xf32> to vector<4x1xf32>
    %50 = arith.mulf %1, %1 : vector<1x256xf32>
    %51 = vector.broadcast %49 : vector<4x1xf32> to vector<4x256xf32>
    %52 = vector.broadcast %50 : vector<1x256xf32> to vector<4x256xf32>
    %53 = arith.mulf %51, %52 : vector<4x256xf32>
    %c4_26 = arith.constant 4 : index
    %c0_27 = arith.constant 0 : index
    %c0_28 = arith.constant 0 : index
    %54 = vector.load %arg6[%c4_26, %c0_27, %c0_28] : memref<9x4x256xf32, #tpu.memory_space<vmem>>, vector<1x4x256xf32>
    %55 = vector.shape_cast %54 : vector<1x4x256xf32> to vector<4x256xf32>
    %56 = vector.shape_cast %53 : vector<4x256xf32> to vector<1x4x256xf32>
    tpu.vector_store %arg6[%c4_26, %c0_27, %c0_28], %56 {strides = array<i32>} : memref<9x4x256xf32, #tpu.memory_space<vmem>>, vector<1x4x256xf32>,
    %c5 = arith.constant 5 : index
    %c0_29 = arith.constant 0 : index
    %c0_30 = arith.constant 0 : index
    %57 = vector.load %arg1[%c5, %c0_29, %c0_30] : memref<9x4x1xf32, #tpu.memory_space<vmem>>, vector<1x4x1xf32>
    %58 = vector.shape_cast %57 : vector<1x4x1xf32> to vector<4x1xf32>
    %59 = arith.mulf %1, %11 : vector<1x256xf32>
    %60 = vector.broadcast %58 : vector<4x1xf32> to vector<4x256xf32>
    %61 = vector.broadcast %59 : vector<1x256xf32> to vector<4x256xf32>
    %62 = arith.mulf %60, %61 : vector<4x256xf32>
    %c5_31 = arith.constant 5 : index
    %c0_32 = arith.constant 0 : index
    %c0_33 = arith.constant 0 : index
    %63 = vector.load %arg6[%c5_31, %c0_32, %c0_33] : memref<9x4x256xf32, #tpu.memory_space<vmem>>, vector<1x4x256xf32>
    %64 = vector.shape_cast %63 : vector<1x4x256xf32> to vector<4x256xf32>
    %65 = vector.shape_cast %62 : vector<4x256xf32> to vector<1x4x256xf32>
    tpu.vector_store %arg6[%c5_31, %c0_32, %c0_33], %65 {strides = array<i32>} : memref<9x4x256xf32, #tpu.memory_space<vmem>>, vector<1x4x256xf32>,
    %c6 = arith.constant 6 : index
    %c0_34 = arith.constant 0 : index
    %c0_35 = arith.constant 0 : index
    %66 = vector.load %arg1[%c6, %c0_34, %c0_35] : memref<9x4x1xf32, #tpu.memory_space<vmem>>, vector<1x4x1xf32>
    %67 = vector.shape_cast %66 : vector<1x4x1xf32> to vector<4x1xf32>
    %68 = arith.mulf %9, %10 : vector<1x256xf32>
    %69 = vector.broadcast %67 : vector<4x1xf32> to vector<4x256xf32>
    %70 = vector.broadcast %68 : vector<1x256xf32> to vector<4x256xf32>
    %71 = arith.mulf %69, %70 : vector<4x256xf32>
    %c6_36 = arith.constant 6 : index
    %c0_37 = arith.constant 0 : index
    %c0_38 = arith.constant 0 : index
    %72 = vector.load %arg6[%c6_36, %c0_37, %c0_38] : memref<9x4x256xf32, #tpu.memory_space<vmem>>, vector<1x4x256xf32>
    %73 = vector.shape_cast %72 : vector<1x4x256xf32> to vector<4x256xf32>
    %74 = vector.shape_cast %71 : vector<4x256xf32> to vector<1x4x256xf32>
    tpu.vector_store %arg6[%c6_36, %c0_37, %c0_38], %74 {strides = array<i32>} : memref<9x4x256xf32, #tpu.memory_space<vmem>>, vector<1x4x256xf32>,
    %c7 = arith.constant 7 : index
    %c0_39 = arith.constant 0 : index
    %c0_40 = arith.constant 0 : index
    %75 = vector.load %arg1[%c7, %c0_39, %c0_40] : memref<9x4x1xf32, #tpu.memory_space<vmem>>, vector<1x4x1xf32>
    %76 = vector.shape_cast %75 : vector<1x4x1xf32> to vector<4x1xf32>
    %77 = arith.mulf %9, %1 : vector<1x256xf32>
    %78 = vector.broadcast %76 : vector<4x1xf32> to vector<4x256xf32>
    %79 = vector.broadcast %77 : vector<1x256xf32> to vector<4x256xf32>
    %80 = arith.mulf %78, %79 : vector<4x256xf32>
    %c7_41 = arith.constant 7 : index
    %c0_42 = arith.constant 0 : index
    %c0_43 = arith.constant 0 : index
    %81 = vector.load %arg6[%c7_41, %c0_42, %c0_43] : memref<9x4x256xf32, #tpu.memory_space<vmem>>, vector<1x4x256xf32>
    %82 = vector.shape_cast %81 : vector<1x4x256xf32> to vector<4x256xf32>
    %83 = vector.shape_cast %80 : vector<4x256xf32> to vector<1x4x256xf32>
    tpu.vector_store %arg6[%c7_41, %c0_42, %c0_43], %83 {strides = array<i32>} : memref<9x4x256xf32, #tpu.memory_space<vmem>>, vector<1x4x256xf32>,
    %c8 = arith.constant 8 : index
    %c0_44 = arith.constant 0 : index
    %c0_45 = arith.constant 0 : index
    %84 = vector.load %arg1[%c8, %c0_44, %c0_45] : memref<9x4x1xf32, #tpu.memory_space<vmem>>, vector<1x4x1xf32>
    %85 = vector.shape_cast %84 : vector<1x4x1xf32> to vector<4x1xf32>
    %86 = arith.mulf %9, %11 : vector<1x256xf32>
    %87 = vector.broadcast %85 : vector<4x1xf32> to vector<4x256xf32>
    %88 = vector.broadcast %86 : vector<1x256xf32> to vector<4x256xf32>
    %89 = arith.mulf %87, %88 : vector<4x256xf32>
    %c8_46 = arith.constant 8 : index
    %c0_47 = arith.constant 0 : index
    %c0_48 = arith.constant 0 : index
    %90 = vector.load %arg6[%c8_46, %c0_47, %c0_48] : memref<9x4x256xf32, #tpu.memory_space<vmem>>, vector<1x4x256xf32>
    %91 = vector.shape_cast %90 : vector<1x4x256xf32> to vector<4x256xf32>
    %92 = vector.shape_cast %89 : vector<4x256xf32> to vector<1x4x256xf32>
    tpu.vector_store %arg6[%c8_46, %c0_47, %c0_48], %92 {strides = array<i32>} : memref<9x4x256xf32, #tpu.memory_space<vmem>>, vector<1x4x256xf32>,
    %c0_49 = arith.constant 0 : index
    %c0_50 = arith.constant 0 : index
    %93 = vector.load %arg3[%c0_49, %c0_50] : memref<1x256xf32, #tpu.memory_space<vmem>>, vector<1x256xf32>
    %c0_51 = arith.constant 0 : index
    %c0_52 = arith.constant 0 : index
    %c0_53 = arith.constant 0 : index
    %94 = vector.load %arg4[%c0_51, %c0_52, %c0_53] : memref<2x4x256xf32, #tpu.memory_space<vmem>>, vector<1x4x256xf32>
    %95 = vector.shape_cast %94 : vector<1x4x256xf32> to vector<4x256xf32>
    %c4_54 = arith.constant 4 : index
    %c0_55 = arith.constant 0 : index
    %c0_56 = arith.constant 0 : index
    %96 = vector.load %arg6[%c4_54, %c0_55, %c0_56] : memref<9x4x256xf32, #tpu.memory_space<vmem>>, vector<1x4x256xf32>
    %97 = vector.shape_cast %96 : vector<1x4x256xf32> to vector<4x256xf32>
    %98 = arith.mulf %97, %95 : vector<4x256xf32>
    %c17_i32 = arith.constant 17 : i32
    %99 = tpu.dynamic_rotate %95 by %c17_i32 dim 1 : vector<4x256xf32>, i32 -> vector<4x256xf32>
    %c0_57 = arith.constant 0 : index
    %c0_58 = arith.constant 0 : index
    %c0_59 = arith.constant 0 : index
    %100 = vector.load %arg6[%c0_57, %c0_58, %c0_59] : memref<9x4x256xf32, #tpu.memory_space<vmem>>, vector<1x4x256xf32>
    %101 = vector.shape_cast %100 : vector<1x4x256xf32> to vector<4x256xf32>
    %102 = arith.mulf %101, %99 : vector<4x256xf32>
    %103 = arith.addf %98, %102 : vector<4x256xf32>
    %c16_i32_60 = arith.constant 16 : i32
    %104 = tpu.dynamic_rotate %95 by %c16_i32_60 dim 1 : vector<4x256xf32>, i32 -> vector<4x256xf32>
    %c1_61 = arith.constant 1 : index
    %c0_62 = arith.constant 0 : index
    %c0_63 = arith.constant 0 : index
    %105 = vector.load %arg6[%c1_61, %c0_62, %c0_63] : memref<9x4x256xf32, #tpu.memory_space<vmem>>, vector<1x4x256xf32>
    %106 = vector.shape_cast %105 : vector<1x4x256xf32> to vector<4x256xf32>
    %107 = arith.mulf %106, %104 : vector<4x256xf32>
    %108 = arith.addf %103, %107 : vector<4x256xf32>
    %c15_i32 = arith.constant 15 : i32
    %109 = tpu.dynamic_rotate %95 by %c15_i32 dim 1 : vector<4x256xf32>, i32 -> vector<4x256xf32>
    %c2_64 = arith.constant 2 : index
    %c0_65 = arith.constant 0 : index
    %c0_66 = arith.constant 0 : index
    %110 = vector.load %arg6[%c2_64, %c0_65, %c0_66] : memref<9x4x256xf32, #tpu.memory_space<vmem>>, vector<1x4x256xf32>
    %111 = vector.shape_cast %110 : vector<1x4x256xf32> to vector<4x256xf32>
    %112 = arith.mulf %111, %109 : vector<4x256xf32>
    %113 = arith.addf %108, %112 : vector<4x256xf32>
    %c1_i32 = arith.constant 1 : i32
    %114 = tpu.dynamic_rotate %95 by %c1_i32 dim 1 : vector<4x256xf32>, i32 -> vector<4x256xf32>
    %c3_67 = arith.constant 3 : index
    %c0_68 = arith.constant 0 : index
    %c0_69 = arith.constant 0 : index
    %115 = vector.load %arg6[%c3_67, %c0_68, %c0_69] : memref<9x4x256xf32, #tpu.memory_space<vmem>>, vector<1x4x256xf32>
    %116 = vector.shape_cast %115 : vector<1x4x256xf32> to vector<4x256xf32>
    %117 = arith.mulf %116, %114 : vector<4x256xf32>
    %118 = arith.addf %113, %117 : vector<4x256xf32>
    %c255_i32 = arith.constant 255 : i32
    %119 = tpu.dynamic_rotate %95 by %c255_i32 dim 1 : vector<4x256xf32>, i32 -> vector<4x256xf32>
    %c5_70 = arith.constant 5 : index
    %c0_71 = arith.constant 0 : index
    %c0_72 = arith.constant 0 : index
    %120 = vector.load %arg6[%c5_70, %c0_71, %c0_72] : memref<9x4x256xf32, #tpu.memory_space<vmem>>, vector<1x4x256xf32>
    %121 = vector.shape_cast %120 : vector<1x4x256xf32> to vector<4x256xf32>
    %122 = arith.mulf %121, %119 : vector<4x256xf32>
    %123 = arith.addf %118, %122 : vector<4x256xf32>
    %c241_i32 = arith.constant 241 : i32
    %124 = tpu.dynamic_rotate %95 by %c241_i32 dim 1 : vector<4x256xf32>, i32 -> vector<4x256xf32>
    %c6_73 = arith.constant 6 : index
    %c0_74 = arith.constant 0 : index
    %c0_75 = arith.constant 0 : index
    %125 = vector.load %arg6[%c6_73, %c0_74, %c0_75] : memref<9x4x256xf32, #tpu.memory_space<vmem>>, vector<1x4x256xf32>
    %126 = vector.shape_cast %125 : vector<1x4x256xf32> to vector<4x256xf32>
    %127 = arith.mulf %126, %124 : vector<4x256xf32>
    %128 = arith.addf %123, %127 : vector<4x256xf32>
    %c240_i32_76 = arith.constant 240 : i32
    %129 = tpu.dynamic_rotate %95 by %c240_i32_76 dim 1 : vector<4x256xf32>, i32 -> vector<4x256xf32>
    %c7_77 = arith.constant 7 : index
    %c0_78 = arith.constant 0 : index
    %c0_79 = arith.constant 0 : index
    %130 = vector.load %arg6[%c7_77, %c0_78, %c0_79] : memref<9x4x256xf32, #tpu.memory_space<vmem>>, vector<1x4x256xf32>
    %131 = vector.shape_cast %130 : vector<1x4x256xf32> to vector<4x256xf32>
    %132 = arith.mulf %131, %129 : vector<4x256xf32>
    %133 = arith.addf %128, %132 : vector<4x256xf32>
    %c239_i32 = arith.constant 239 : i32
    %134 = tpu.dynamic_rotate %95 by %c239_i32 dim 1 : vector<4x256xf32>, i32 -> vector<4x256xf32>
    %c8_80 = arith.constant 8 : index
    %c0_81 = arith.constant 0 : index
    %c0_82 = arith.constant 0 : index
    %135 = vector.load %arg6[%c8_80, %c0_81, %c0_82] : memref<9x4x256xf32, #tpu.memory_space<vmem>>, vector<1x4x256xf32>
    %136 = vector.shape_cast %135 : vector<1x4x256xf32> to vector<4x256xf32>
    %137 = arith.mulf %136, %134 : vector<4x256xf32>
    %138 = arith.addf %133, %137 : vector<4x256xf32>
    %cst_83 = arith.constant dense<0.000000e+00> : vector<256xf32>
    %139 = vector.multi_reduction <add>, %138, %cst_83 [0] : vector<4x256xf32> to vector<256xf32>
    %140 = vector.shape_cast %139 : vector<256xf32> to vector<1x256xf32>
    %141 = arith.addf %140, %93 : vector<1x256xf32>
    %c0_84 = arith.constant 0 : index
    %c0_85 = arith.constant 0 : index
    %c0_86 = arith.constant 0 : index
    %142 = vector.load %arg5[%c0_84, %c0_85, %c0_86] : memref<1x2x256xf32, #tpu.memory_space<vmem>>, vector<1x1x256xf32>
    %143 = vector.shape_cast %142 : vector<1x1x256xf32> to vector<1x256xf32>
    %144 = vector.shape_cast %141 : vector<1x256xf32> to vector<1x1x256xf32>
    tpu.vector_store %arg5[%c0_84, %c0_85, %c0_86], %144 {strides = array<i32>} : memref<1x2x256xf32, #tpu.memory_space<vmem>>, vector<1x1x256xf32>,
    %c1_87 = arith.constant 1 : index
    %c0_88 = arith.constant 0 : index
    %c0_89 = arith.constant 0 : index
    %145 = vector.load %arg4[%c1_87, %c0_88, %c0_89] : memref<2x4x256xf32, #tpu.memory_space<vmem>>, vector<1x4x256xf32>
    %146 = vector.shape_cast %145 : vector<1x4x256xf32> to vector<4x256xf32>
    %c4_90 = arith.constant 4 : index
    %c0_91 = arith.constant 0 : index
    %c0_92 = arith.constant 0 : index
    %147 = vector.load %arg6[%c4_90, %c0_91, %c0_92] : memref<9x4x256xf32, #tpu.memory_space<vmem>>, vector<1x4x256xf32>
    %148 = vector.shape_cast %147 : vector<1x4x256xf32> to vector<4x256xf32>
    %149 = arith.mulf %148, %146 : vector<4x256xf32>
    %c17_i32_93 = arith.constant 17 : i32
    %150 = tpu.dynamic_rotate %146 by %c17_i32_93 dim 1 : vector<4x256xf32>, i32 -> vector<4x256xf32>
    %c0_94 = arith.constant 0 : index
    %c0_95 = arith.constant 0 : index
    %c0_96 = arith.constant 0 : index
    %151 = vector.load %arg6[%c0_94, %c0_95, %c0_96] : memref<9x4x256xf32, #tpu.memory_space<vmem>>, vector<1x4x256xf32>
    %152 = vector.shape_cast %151 : vector<1x4x256xf32> to vector<4x256xf32>
    %153 = arith.mulf %152, %150 : vector<4x256xf32>
    %154 = arith.addf %149, %153 : vector<4x256xf32>
    %c16_i32_97 = arith.constant 16 : i32
    %155 = tpu.dynamic_rotate %146 by %c16_i32_97 dim 1 : vector<4x256xf32>, i32 -> vector<4x256xf32>
    %c1_98 = arith.constant 1 : index
    %c0_99 = arith.constant 0 : index
    %c0_100 = arith.constant 0 : index
    %156 = vector.load %arg6[%c1_98, %c0_99, %c0_100] : memref<9x4x256xf32, #tpu.memory_space<vmem>>, vector<1x4x256xf32>
    %157 = vector.shape_cast %156 : vector<1x4x256xf32> to vector<4x256xf32>
    %158 = arith.mulf %157, %155 : vector<4x256xf32>
    %159 = arith.addf %154, %158 : vector<4x256xf32>
    %c15_i32_101 = arith.constant 15 : i32
    %160 = tpu.dynamic_rotate %146 by %c15_i32_101 dim 1 : vector<4x256xf32>, i32 -> vector<4x256xf32>
    %c2_102 = arith.constant 2 : index
    %c0_103 = arith.constant 0 : index
    %c0_104 = arith.constant 0 : index
    %161 = vector.load %arg6[%c2_102, %c0_103, %c0_104] : memref<9x4x256xf32, #tpu.memory_space<vmem>>, vector<1x4x256xf32>
    %162 = vector.shape_cast %161 : vector<1x4x256xf32> to vector<4x256xf32>
    %163 = arith.mulf %162, %160 : vector<4x256xf32>
    %164 = arith.addf %159, %163 : vector<4x256xf32>
    %c1_i32_105 = arith.constant 1 : i32
    %165 = tpu.dynamic_rotate %146 by %c1_i32_105 dim 1 : vector<4x256xf32>, i32 -> vector<4x256xf32>
    %c3_106 = arith.constant 3 : index
    %c0_107 = arith.constant 0 : index
    %c0_108 = arith.constant 0 : index
    %166 = vector.load %arg6[%c3_106, %c0_107, %c0_108] : memref<9x4x256xf32, #tpu.memory_space<vmem>>, vector<1x4x256xf32>
    %167 = vector.shape_cast %166 : vector<1x4x256xf32> to vector<4x256xf32>
    %168 = arith.mulf %167, %165 : vector<4x256xf32>
    %169 = arith.addf %164, %168 : vector<4x256xf32>
    %c255_i32_109 = arith.constant 255 : i32
    %170 = tpu.dynamic_rotate %146 by %c255_i32_109 dim 1 : vector<4x256xf32>, i32 -> vector<4x256xf32>
    %c5_110 = arith.constant 5 : index
    %c0_111 = arith.constant 0 : index
    %c0_112 = arith.constant 0 : index
    %171 = vector.load %arg6[%c5_110, %c0_111, %c0_112] : memref<9x4x256xf32, #tpu.memory_space<vmem>>, vector<1x4x256xf32>
    %172 = vector.shape_cast %171 : vector<1x4x256xf32> to vector<4x256xf32>
    %173 = arith.mulf %172, %170 : vector<4x256xf32>
    %174 = arith.addf %169, %173 : vector<4x256xf32>
    %c241_i32_113 = arith.constant 241 : i32
    %175 = tpu.dynamic_rotate %146 by %c241_i32_113 dim 1 : vector<4x256xf32>, i32 -> vector<4x256xf32>
    %c6_114 = arith.constant 6 : index
    %c0_115 = arith.constant 0 : index
    %c0_116 = arith.constant 0 : index
    %176 = vector.load %arg6[%c6_114, %c0_115, %c0_116] : memref<9x4x256xf32, #tpu.memory_space<vmem>>, vector<1x4x256xf32>
    %177 = vector.shape_cast %176 : vector<1x4x256xf32> to vector<4x256xf32>
    %178 = arith.mulf %177, %175 : vector<4x256xf32>
    %179 = arith.addf %174, %178 : vector<4x256xf32>
    %c240_i32_117 = arith.constant 240 : i32
    %180 = tpu.dynamic_rotate %146 by %c240_i32_117 dim 1 : vector<4x256xf32>, i32 -> vector<4x256xf32>
    %c7_118 = arith.constant 7 : index
    %c0_119 = arith.constant 0 : index
    %c0_120 = arith.constant 0 : index
    %181 = vector.load %arg6[%c7_118, %c0_119, %c0_120] : memref<9x4x256xf32, #tpu.memory_space<vmem>>, vector<1x4x256xf32>
    %182 = vector.shape_cast %181 : vector<1x4x256xf32> to vector<4x256xf32>
    %183 = arith.mulf %182, %180 : vector<4x256xf32>
    %184 = arith.addf %179, %183 : vector<4x256xf32>
    %c239_i32_121 = arith.constant 239 : i32
    %185 = tpu.dynamic_rotate %146 by %c239_i32_121 dim 1 : vector<4x256xf32>, i32 -> vector<4x256xf32>
    %c8_122 = arith.constant 8 : index
    %c0_123 = arith.constant 0 : index
    %c0_124 = arith.constant 0 : index
    %186 = vector.load %arg6[%c8_122, %c0_123, %c0_124] : memref<9x4x256xf32, #tpu.memory_space<vmem>>, vector<1x4x256xf32>
    %187 = vector.shape_cast %186 : vector<1x4x256xf32> to vector<4x256xf32>
    %188 = arith.mulf %187, %185 : vector<4x256xf32>
    %189 = arith.addf %184, %188 : vector<4x256xf32>
    %cst_125 = arith.constant dense<0.000000e+00> : vector<256xf32>
    %190 = vector.multi_reduction <add>, %189, %cst_125 [0] : vector<4x256xf32> to vector<256xf32>
    %191 = vector.shape_cast %190 : vector<256xf32> to vector<1x256xf32>
    %192 = arith.addf %191, %93 : vector<1x256xf32>
    %c0_126 = arith.constant 0 : index
    %c1_127 = arith.constant 1 : index
    %c0_128 = arith.constant 0 : index
    %193 = vector.load %arg5[%c0_126, %c1_127, %c0_128] : memref<1x2x256xf32, #tpu.memory_space<vmem>>, vector<1x1x256xf32>
    %194 = vector.shape_cast %193 : vector<1x1x256xf32> to vector<1x256xf32>
    %195 = vector.shape_cast %192 : vector<1x256xf32> to vector<1x1x256xf32>
    tpu.vector_store %arg5[%c0_126, %c1_127, %c0_128], %195 {strides = array<i32>} : memref<1x2x256xf32, #tpu.memory_space<vmem>>, vector<1x1x256xf32>,
    return
  }
  func.func @transform_0(%arg0: i32) -> (i32, i32, i32) {
    %c0_i32 = arith.constant 0 : i32
    %c0_i32_0 = arith.constant 0 : i32
    %c0_i32_1 = arith.constant 0 : i32
    %c0_i32_2 = arith.constant 0 : i32
    return %c0_i32, %c0_i32_0, %c0_i32_1 : i32, i32, i32
  }
  func.func @transform_1(%arg0: i32) -> (i32, i32) {
    %c0_i32 = arith.constant 0 : i32
    %c0_i32_0 = arith.constant 0 : i32
    %c0_i32_1 = arith.constant 0 : i32
    return %c0_i32, %c0_i32_0 : i32, i32
  }
  func.func @transform_2(%arg0: i32) -> (i32, i32) {
    %c0_i32 = arith.constant 0 : i32
    %c0_i32_0 = arith.constant 0 : i32
    %c0_i32_1 = arith.constant 0 : i32
    return %c0_i32, %c0_i32_0 : i32, i32
  }
  func.func @transform_3(%arg0: i32) -> (i32, i32, i32) {
    %c0_i32 = arith.constant 0 : i32
    %c0_i32_0 = arith.constant 0 : i32
    %c0_i32_1 = arith.constant 0 : i32
    return %arg0, %c0_i32, %c0_i32_0 : i32, i32, i32
  }
  func.func @transform_4(%arg0: i32) -> (i32, i32, i32) {
    %c0_i32 = arith.constant 0 : i32
    %c0_i32_0 = arith.constant 0 : i32
    %c0_i32_1 = arith.constant 0 : i32
    return %arg0, %c0_i32, %c0_i32_0 : i32, i32, i32
  }
}

</mosaic_0001>

<bundles_post_ra>
// kernel: tpu_custom_call.1
= control target key start
LH: loop header
LB: loop body
LE: loop exit
PB: predicated region body
PF: predicated region fallthrough
CT: control target
= control target key end

     0   :  { %v620_v2 = vmov 0   ;;  %s939_s0 = inlined_call_operand.vmem [shape: f32[9,4,1], index: 0, kind: input, shape index: {}]   ;;  %s940_s1 = inlined_call_operand.vmem [shape: f32[2,256], index: 1, kind: input, shape index: {}]   ;;  %s941_s2 = inlined_call_operand.vmem [shape: f32[1,256], index: 2, kind: input, shape index: {}]   ;;  %s942_s3 = inlined_call_operand.vmem [shape: f32[2,4,256], index: 3, kind: input, shape index: {}]   ;;  %s943_s4 = inlined_call_operand.hbm [shape: f32[1,2,256], index: 4, kind: output, shape index: {}]  }
   0x1   :  { %v575_v0 = vld [vmem:[%s939_s0 + $0x10] sm:$0xf]  ;;  %v36_v1 = vld [vmem:[%s939_s0] sm:$0xf]  ;;  %595 = vset.pattern.permute.xlu1 %v620_v2  ;;  %594 = vset.pattern.permute.xlu0 %v620_v2  ;;  %v573_v3 = vld [vmem:[%s939_s0 + $0x8] sm:$0xf] }
   0x2   :  { %140 = vperm.xlu1 %595, %v575_v0   ;;  %52 = vperm.xlu0 %594, %v36_v1   ;;  %v572_v4 = vld [vmem:[%s939_s0 + $0x4] sm:$0xf] }
   0x3   :  { %9 = vsyncpa [#allocation4], 0  ;;  %v673_v5 = vld [vmem:[%s942_s3] sm:$0xff]  ;;  %v574_v6 = vld [vmem:[%s939_s0 + $0xc] sm:$0xf]  ;;  %s621_s27 = smov 17   ;;  %v18_v30 = vlaneseq }
   0x4   :  { %v237_v7 = vcombine.high %v673_v5, %v673_v5  ;;  %v684_v8 = vld [vmem:[%s942_s3 + $0x8] sm:$0xff]  ;;  %v576_v10 = vld [vmem:[%s939_s0 + $0x14] sm:$0xf]  ;;  %s622_s6 = smov 16   ;;  %v577_v11 = vld [vmem:[%s939_s0 + $0x18] sm:$0xf] }
   0x5   :  { %v410_v9 = vcombine.high %v684_v8, %v684_v8  ;;  %s623_s8 = smov 15   ;;  %v578_v12 = vld [vmem:[%s939_s0 + $0x1c] sm:$0xf]  ;;  %s624_s11 = smov 1   ;;  %v579_v13 = vld [vmem:[%s939_s0 + $0x20] sm:$0xf] }
   0x6   :  { %102 = vperm.xlu1 %595, %v573_v3   ;;  %74 = vperm.xlu0 %594, %v572_v4   ;;  %s625_s14 = smov 127   ;;  %s626_s15 = smov 113   ;;  %v738_v33 = vshrl.u32 %v18_v30, 7  ;;  %v741_v34 = vand.u32 127, %v18_v30  ;;  %v629_v45 = vmov 0.0   ;;  %vm354_vm10 = vcmask 1043456  }
   0x7   :  { %s627_s16 = smov 112   ;;  %s628_s0 = smov 111   ;;  %v33_v38 = vld [vmem:[%s940_s1] ss:$2 sm:$0x3]  ;;  %vm402_vm11 = vcmp.lt.s32.totalorder %v18_v30, 256 }
   0x8   :  { %v748_v37 = vsub.s32 0, %v738_v33  ;;  %vm21_vm0 = vcmp.ge.s32.totalorder %v741_v34, 16  ;;  %v571_v39 = vld [vmem:[%s940_s1 + $0x1] ss:$2 sm:$0x3]  ;;  %v20_v40 = vadd.s32 128, %v741_v34 }
   0x9   :  { %v766_v44 = vsub.s32 1, %v738_v33  ;;  %v569_v46 = vsel %vm21_vm0, 1.0, %v629_v45  ;;  %v630_v47 = vmov 839922192   ;;  %vm243_vm2 = vcmp.lt.s32.totalorder %v741_v34, 17 }
   0xa   :  { %239 = vrot.lane.b32.xlu1 %v673_v5, %s621_s27  ;;  %125 = vperm.xlu0 %594, %v574_v6   ;;  %v763_v43 = vrot.slane %v33_v38, %v748_v37  ;;  %v143_v48 = vunpack.c.l.s4 %v630_v47  ;;  %v769_v49 = vrot.slane %v571_v39, %v748_v37  ;;  %vm28_vm1 = vcmp.lt.s32.totalorder %v20_v40, 240 }
   0xb   :  { %v45_v52 = vrot.slane %v33_v38, %v766_v44  ;;  %v778_v55 = vrot.slane %v571_v39, %v766_v44  ;;  %v781_v57 = vsel %vm28_vm1, 1.0, %v629_v45  ;;  %vm257_vm3 = vcmp.lt.s32.totalorder %v741_v34, 16 }
   0xc   :  { %v48_v53 = vmul.f32 %v569_v46, %v763_v43  ;;  %v144_v54 = vunpack.c.0.s8 %v143_v48  ;;  %v98_v56 = vmul.f32 %v569_v46, %v769_v49  ;;  %vm271_vm4 = vcmp.lt.s32.totalorder %v741_v34, 15 }
   0xd   :  { %v62_v61 = vrot.slane %v45_v52, %v748_v37  ;;  %v791_v62 = vmul.f32 %v781_v57, %v45_v52  ;;  %v112_v1 = vrot.slane %v778_v55, %v748_v37  ;;  %v800_v4 = vmul.f32 %v781_v57, %v778_v55 }
   0xe   :  { %412 = vrot.lane.b32.xlu1 %v684_v8, %s621_s27  ;;  %241 = vrot.lane.b32.xlu0 %v237_v7, %s621_s27  ;;  %v58_v60 = vrot.slane %v48_v53, %v748_v37  ;;  %v147_v63 = vsub.s32 %v144_v54, %v738_v33  ;;  %v108_v0 = vrot.slane %v98_v56, %v748_v37  ;;  %vm285_vm5 = vcmp.lt.s32.totalorder %v741_v34, 1 }
   0xf   :  { %v183_v38 = vrot.slane %v791_v62, %v748_v37  ;;  %v223_v40 = vrot.slane %v800_v4, %v748_v37  ;;  %vm299_vm6 = vcmp.lt.s32.totalorder %v741_v34, 127  ;;  %vm313_vm7 = vcmp.lt.s32.totalorder %v741_v34, 113 }
  0x10   :  { %vm327_vm8 = vcmp.lt.s32.totalorder %v741_v34, 112  ;;  %vm341_vm9 = vcmp.lt.s32.totalorder %v741_v34, 111 }
  0x12   :  { %156 = vperm.xlu1 %595, %v576_v10   ;;  %414 = vrot.lane.b32.xlu0 %v410_v9, %s621_s27 }
  0x16   :  { %255 = vrot.lane.b32.xlu1 %v237_v7, %s622_s6  ;;  %253 = vrot.lane.b32.xlu0 %v673_v5, %s622_s6 }
  0x1a   :  { %427 = vrot.lane.b32.xlu1 %v410_v9, %s622_s6  ;;  %425 = vrot.lane.b32.xlu0 %v684_v8, %s622_s6 }
  0x1e   :  { %267 = vrot.lane.b32.xlu1 %v673_v5, %s623_s8  ;;  %173 = vperm.xlu0 %594, %v577_v11  }
  0x22   :  { %438 = vrot.lane.b32.xlu1 %v684_v8, %s623_s8  ;;  %269 = vrot.lane.b32.xlu0 %v237_v7, %s623_s8 }
  0x26   :  { %196 = vperm.xlu1 %595, %v578_v12   ;;  %440 = vrot.lane.b32.xlu0 %v410_v9, %s623_s8 }
  0x2a   :  { %281 = vrot.lane.b32.xlu0 %v673_v5, %s624_s11  ;;  %283 = vrot.lane.b32.xlu1 %v237_v7, %s624_s11 }
  0x2e   :  { %451 = vrot.lane.b32.xlu0 %v684_v8, %s624_s11  ;;  %453 = vrot.lane.b32.xlu1 %v410_v9, %s624_s11 }
  0x32   :  { %213 = vperm.xlu0 %594, %v579_v13   ;;  %295 = vrot.lane.b32.xlu1 %v673_v5, %s625_s14  ;;  %v179_v13 = vrot.slane %v763_v43, %v748_v37 }
  0x36   :  { %297 = vrot.lane.b32.xlu0 %v237_v7, %s625_s14  ;;  %464 = vrot.lane.b32.xlu1 %v684_v8, %s625_s14 }
  0x3a   :  { %466 = vrot.lane.b32.xlu0 %v410_v9, %s625_s14  ;;  %309 = vrot.lane.b32.xlu1 %v673_v5, %s626_s15 }
  0x3e   :  { %311 = vrot.lane.b32.xlu0 %v237_v7, %s626_s15  ;;  %477 = vrot.lane.b32.xlu1 %v684_v8, %s626_s15 }
  0x42   :  { %479 = vrot.lane.b32.xlu0 %v410_v9, %s626_s15  ;;  %323 = vrot.lane.b32.xlu1 %v673_v5, %s627_s16 }
  0x46   :  { %325 = vrot.lane.b32.xlu0 %v237_v7, %s627_s16  ;;  %490 = vrot.lane.b32.xlu1 %v684_v8, %s627_s16 }
  0x4a   :  { %492 = vrot.lane.b32.xlu0 %v410_v9, %s627_s16  ;;  %337 = vrot.lane.b32.xlu1 %v673_v5, %s628_s0 }
  0x4e   :  { %339 = vrot.lane.b32.xlu0 %v237_v7, %s628_s0  ;;  %503 = vrot.lane.b32.xlu1 %v684_v8, %s628_s0 }
  0x52   :  { %505 = vrot.lane.b32.xlu0 %v410_v9, %s628_s0 }
  0x7d   :  { %v715_v14 = vpop.permute.xlu1 %140  ;;  %v53_v15 = vpop.permute.xlu0 %52 }
  0x7e   :  { %v63_v9 = vmul.f32 %v58_v60, %v53_v15  ;;  %v64_v10 = vmul.f32 %v62_v61, %v53_v15  ;;  %v219_v15 = vrot.slane %v769_v49, %v748_v37  ;;  %v148_v48 = vrot.slane %v715_v14, %v147_v63 }
  0x80   :  { %v67_v53 = vcombine.low %v63_v9, %v64_v10 }
  0x81   :  { %v717_v16 = vpop.permute.xlu1 %102  ;;  %v719_v17 = vpop.permute.xlu0 %74 }
  0x82   :  { %v113_v54 = vmul.f32 %v108_v0, %v717_v16  ;;  %v235_v0 = vmul.f32 %v673_v5, %v148_v48 }
  0x85   :  { %v240_v18 = vpop.permute.xlu1 %239  ;;  %v721_v19 = vpop.permute.xlu0 %125 }
  0x89   :  { %v413_v20 = vpop.permute.xlu1 %412  ;;  %v242_v21 = vpop.permute.xlu0 %241 }
  0x8a   :  { %v244_v2 = vsel %vm243_vm2, %v240_v18, %v242_v21  ;;  %v245_v3 = vsel %vm243_vm2, %v242_v21, %v240_v18 }
  0x8b   :  { %v249_v18 = vcombine.low %v245_v3, %v244_v2 }
  0x8d   :  { %v723_v22 = vpop.permute.xlu1 %156  ;;  %v415_v23 = vpop.permute.xlu0 %414  ;;  %v251_v60 = vmul.f32 %v249_v18, %v67_v53 }
  0x8e   :  { %v416_v11 = vsel %vm243_vm2, %v413_v20, %v415_v23  ;;  %v417_v12 = vsel %vm243_vm2, %v415_v23, %v413_v20  ;;  %v77_v20 = vmul.f32 %v569_v46, %v719_v17  ;;  %v129_v46 = vmul.f32 %v721_v19, %v45_v52 }
  0x8f   :  { %v421_v23 = vcombine.low %v417_v12, %v416_v11  ;;  %v159_v5 = vmul.f32 %v723_v22, %v769_v49 }
  0x91   :  { %v256_v24 = vpop.permute.xlu1 %255  ;;  %v254_v25 = vpop.permute.xlu0 %253  ;;  %v423_v62 = vmul.f32 %v421_v23, %v67_v53 }
  0x92   :  { %v258_v21 = vsel %vm257_vm3, %v254_v25, %v256_v24  ;;  %v259_v39 = vsel %vm257_vm3, %v256_v24, %v254_v25  ;;  %v114_v24 = vmul.f32 %v112_v1, %v717_v16  ;;  %v128_v25 = vmul.f32 %v721_v19, %v763_v43 }
  0x93   :  { %v263_v56 = vcombine.low %v259_v39, %v258_v21  ;;  %v81_v16 = vcombine.low %v77_v20, %v719_v17 }
  0x94   :  { %v117_v1 = vcombine.low %v113_v54, %v114_v24  ;;  %v132_v2 = vcombine.low %v128_v25, %v129_v46 }
  0x95   :  { %v725_v26 = vpop.permute.xlu1 %427  ;;  %v727_v27 = vpop.permute.xlu0 %425  ;;  %v265_v3 = vmul.f32 %v263_v56, %v81_v16 }
  0x96   :  { %v429_v61 = vsel %vm257_vm3, %v727_v27, %v725_v26  ;;  %v430_v14 = vsel %vm257_vm3, %v725_v26, %v727_v27  ;;  %v408_v26 = vmul.f32 %v684_v8, %v148_v48  ;;  %v160_v8 = vmul.f32 %v723_v22, %v778_v55 }
  0x98   :  { %v424_v10 = vadd.f32 %v423_v62, %v408_v26 }
  0x99   :  { %v729_v28 = vpop.permute.xlu1 %267  ;;  %v731_v29 = vpop.permute.xlu0 %173 }
  0x9a   :  { %v184_v20 = vmul.f32 %v179_v13, %v731_v29  ;;  %v185_v23 = vmul.f32 %v183_v38, %v731_v29 }
  0x9d   :  { %v733_v31 = vpop.permute.xlu1 %438  ;;  %v735_v32 = vpop.permute.xlu0 %269 }
  0x9e   :  { %v272_v19 = vsel %vm271_vm4, %v729_v28, %v735_v32  ;;  %v273_v43 = vsel %vm271_vm4, %v735_v32, %v729_v28  ;;  %v434_v28 = vcombine.low %v430_v14, %v429_v61  ;;  %v252_v32 = vadd.f32 %v251_v60, %v235_v0 }
  0x9f   :  { %v277_v9 = vcombine.low %v273_v43, %v272_v19  ;;  %v188_v60 = vcombine.low %v184_v20, %v185_v23 }
  0xa0   :  { %v436_v39 = vmul.f32 %v434_v28, %v81_v16 }
  0xa1   :  { %v743_v35 = vpop.permute.xlu1 %196  ;;  %v745_v36 = vpop.permute.xlu0 %440  ;;  %v279_v48 = vmul.f32 %v277_v9, %v117_v1 }
  0xa2   :  { %v442_v11 = vsel %vm271_vm4, %v733_v31, %v745_v36  ;;  %v200_v54 = vmul.f32 %v781_v57, %v743_v35  ;;  %v163_v57 = vcombine.low %v159_v5, %v160_v8  ;;  %v437_v56 = vadd.f32 %v436_v39, %v424_v10 }
  0xa5   :  { %v758_v41 = vpop.permute.xlu1 %283  ;;  %v760_v42 = vpop.permute.xlu0 %281 }
  0xa6   :  { %v286_v17 = vsel %vm285_vm5, %v760_v42, %v758_v41  ;;  %v287_v27 = vsel %vm285_vm5, %v758_v41, %v760_v42  ;;  %v443_v41 = vsel %vm271_vm4, %v745_v36, %v733_v31  ;;  %v266_v36 = vadd.f32 %v265_v3, %v252_v32 }
  0xa7   :  { %v291_v42 = vcombine.low %v287_v27, %v286_v17  ;;  %v447_v53 = vcombine.low %v443_v41, %v442_v11 }
  0xa8   :  { %v280_v14 = vadd.f32 %v279_v48, %v266_v36 }
  0xa9   :  { %v771_v50 = vpop.permute.xlu1 %453  ;;  %v773_v51 = vpop.permute.xlu0 %451  ;;  %v449_v16 = vmul.f32 %v447_v53, %v117_v1 }
  0xaa   :  { %v455_v22 = vsel %vm285_vm5, %v773_v51, %v771_v50  ;;  %v456_v55 = vsel %vm285_vm5, %v771_v50, %v773_v51 }
  0xab   :  { %v450_v5 = vadd.f32 %v449_v16, %v437_v56  ;;  %v631_v56 = vmov 1966171168  }
  0xad   :  { %v783_v58 = vpop.permute.xlu0 %213  ;;  %v785_v59 = vpop.permute.xlu1 %295 }
  0xb1   :  { %v298_v6 = vpop.permute.xlu0 %297  ;;  %v802_v7 = vpop.permute.xlu1 %464 }
  0xb2   :  { %v300_v21 = vsel %vm299_vm6, %v785_v59, %v298_v6  ;;  %v301_v31 = vsel %vm299_vm6, %v298_v6, %v785_v59  ;;  %v293_v59 = vmul.f32 %v291_v42, %v132_v2  ;;  %v460_v6 = vcombine.low %v456_v55, %v455_v22 }
  0xb3   :  { %v305_v24 = vcombine.low %v300_v21, %v301_v31 }
  0xb4   :  { %v294_v17 = vadd.f32 %v293_v59, %v280_v14  ;;  %v462_v27 = vmul.f32 %v460_v6, %v132_v2 }
  0xb5   :  { %v467_v45 = vpop.permute.xlu0 %466  ;;  %v310_v47 = vpop.permute.xlu1 %309 }
  0xb6   :  { %v468_v29 = vsel %vm299_vm6, %v802_v7, %v467_v45  ;;  %v469_v38 = vsel %vm299_vm6, %v467_v45, %v802_v7  ;;  %v203_v7 = vcombine.low %v743_v35, %v200_v54  ;;  %v307_v45 = vmul.f32 %v305_v24, %v163_v57 }
  0xb7   :  { %v473_v43 = vcombine.low %v468_v29, %v469_v38  ;;  %v225_v35 = vmul.f32 %v223_v40, %v783_v58  ;;  %v463_v41 = vadd.f32 %v462_v27, %v450_v5 }
  0xb8   :  { %v308_v2 = vadd.f32 %v307_v45, %v294_v17 }
  0xb9   :  { %v312_v52 = vpop.permute.xlu0 %311  ;;  %v478_v63 = vpop.permute.xlu1 %477  ;;  %v475_v8 = vmul.f32 %v473_v43, %v163_v57 }
  0xba   :  { %v314_v50 = vsel %vm313_vm7, %v310_v47, %v312_v52  ;;  %v315_v51 = vsel %vm313_vm7, %v312_v52, %v310_v47 }
  0xbb   :  { %v319_v61 = vcombine.low %v314_v50, %v315_v51  ;;  %v476_v40 = vadd.f32 %v475_v8, %v463_v41 }
  0xbd   :  { %v480_v12 = vpop.permute.xlu0 %479  ;;  %v324_v18 = vpop.permute.xlu1 %323  ;;  %v321_v28 = vmul.f32 %v319_v61, %v188_v60 }
  0xbe   :  { %v481_v62 = vsel %vm313_vm7, %v478_v63, %v480_v12  ;;  %v482_v19 = vsel %vm313_vm7, %v480_v12, %v478_v63  ;;  %v224_v63 = vmul.f32 %v219_v15, %v783_v58 }
  0xbf   :  { %v486_v32 = vcombine.low %v481_v62, %v482_v19  ;;  %v322_v12 = vadd.f32 %v321_v28, %v308_v2  ;;  %v232_v19 = vld [vmem:[%s941_s2] sm:$0x3]  ;;  %s632_s2 = smov [#allocation3]  }
  0xc0   :  { %v228_v15 = vcombine.low %v224_v63, %v225_v35  ;;  %s561_s22 = sshll.u32 %s632_s2, 4  ;;  %s562_s22 = int_to_ptr.vmem [resolvable:$true] %s561_s22 }
  0xc1   :  { %v326_v25 = vpop.permute.xlu0 %325  ;;  %v491_v13 = vpop.permute.xlu1 %490  ;;  %s598_s23 = scalar_lea.vmem %s562_s22, 64  ;;  %p603_p1 = scmp.lt.s32.totalorder %s562_s22, %s562_s22 }
  0xc2   :  { %v328_v46 = vsel %vm327_vm8, %v324_v18, %v326_v25  ;;  %v329_v47 = vsel %vm327_vm8, %v326_v25, %v324_v18  ;;  %v488_v18 = vmul.f32 %v486_v32, %v188_v60  ;;  %v386_v60 = vunpack.c.l.s4 %v631_v56  ;;  %p599_p0 = scmp.ne.s32.totalorder %s562_s22, %s598_s23  ;;  %p604_p2 = scmp.lt.s32.totalorder %s598_s23, %s598_s23 }
  0xc3   :  { %v333_v52 = vcombine.low %v328_v46, %v329_v47 }
  0xc4   :  { %v489_v20 = vadd.f32 %v488_v18, %v476_v40  ;;  %v387_v17 = vunpack.c.0.s8 %v386_v60  ;;  %p605_p3 = por %p604_p2, %p603_p1 }
  0xc5   :  { %v493_v0 = vpop.permute.xlu0 %492  ;;  %v338_v26 = vpop.permute.xlu1 %337  ;;  %v335_v9 = vmul.f32 %v333_v52, %v203_v7 }
  0xc6   :  { %v494_v3 = vsel %vm327_vm8, %v491_v13, %v493_v0  ;;  %v495_v1 = vsel %vm327_vm8, %v493_v0, %v491_v13  ;;  %v373_v0 = vrot.slane %v232_v19, %v748_v37  ;;  %v390_v5 = vsub.s32 %v387_v17, %v738_v33  ;;  %p606_p4 = pnand %p605_p3, %p599_p0 }
  0xc7   :  { %v499_v10 = vcombine.low %v494_v3, %v495_v1  ;;  %v336_v22 = vadd.f32 %v335_v9, %v322_v12 }
  0xc9   :  { %v340_v11 = vpop.permute.xlu0 %339  ;;  %v504_v58 = vpop.permute.xlu1 %503  ;;  %v501_v55 = vmul.f32 %v499_v10, %v203_v7 }
  0xca   :  { %v342_v42 = vsel %vm341_vm9, %v338_v26, %v340_v11  ;;  %v343_v49 = vsel %vm341_vm9, %v340_v11, %v338_v26  ;;  %v377_v26 = vrot.slane %v232_v19, %v766_v44 }
  0xcb   :  { %v347_v4 = vcombine.low %v342_v42, %v343_v49  ;;  %v502_v53 = vadd.f32 %v501_v55, %v489_v20 }
  0xcd   :  { %v349_v21 = vmul.f32 %v347_v4, %v228_v15  ;;  %v506_v31 = vpop.permute.xlu0 %505 }
  0xce   :  { %v507_v36 = vsel %vm341_vm9, %v504_v58, %v506_v31  ;;  %v508_v39 = vsel %vm341_vm9, %v506_v31, %v504_v58 }
  0xcf   :  { %v350_v23 = vadd.f32 %v349_v21, %v336_v22  ;;  %v512_v48 = vcombine.low %v507_v36, %v508_v39 }
  0xd1   :  { %v352_v50 = vcombine.high %v350_v23, %v350_v23  ;;  %v355_v51 = vsel %vm354_vm10, %v350_v23, 0.0  ;;  %v514_v54 = vmul.f32 %v512_v48, %v228_v15 }
  0xd2   :  { %v356_v59 = vrot.slane %v355_v51, 4 }
  0xd3   :  { %v362_v6 = vsel %vm354_vm10, %v352_v50, 0.0  ;;  %v515_v24 = vadd.f32 %v514_v54, %v502_v53 }
  0xd4   :  { %v357_v25 = vadd.f32 %v356_v59, %v355_v51  ;;  %v363_v13 = vrot.slane %v362_v6, 4 }
  0xd5   :  { %v517_v29 = vcombine.high %v515_v24, %v515_v24  ;;  %v519_v38 = vsel %vm354_vm10, %v515_v24, 0.0 }
  0xd6   :  { %v358_v46 = vrot.slane %v357_v25, 2  ;;  %v364_v34 = vadd.f32 %v363_v13, %v362_v6  ;;  %v520_v47 = vrot.slane %v519_v38, 4 }
  0xd7   :  { %v526_v57 = vsel %vm354_vm10, %v517_v29, 0.0 }
  0xd8   :  { %v359_v61 = vadd.f32 %v358_v46, %v357_v25  ;;  %v365_v14 = vrot.slane %v364_v34, 2  ;;  %v521_v16 = vadd.f32 %v520_v47, %v519_v38  ;;  %v527_v62 = vrot.slane %v526_v57, 4 }
  0xda   :  { %v360_v7 = vrot.slane %v359_v61, 1  ;;  %v366_v45 = vadd.f32 %v365_v14, %v364_v34  ;;  %v522_v43 = vrot.slane %v521_v16, 2  ;;  %v528_v52 = vadd.f32 %v527_v62, %v526_v57 }
  0xdc   :  { %v523_v27 = vadd.f32 %v522_v43, %v521_v16  ;;  %v529_v3 = vrot.slane %v528_v52, 2  ;;  %v361_v1 = vadd.f32 %v360_v7, %v359_v61  ;;  %v367_v63 = vrot.slane %v366_v45, 1 }
  0xde   :  { %v524_v35 = vrot.slane %v523_v27, 1  ;;  %v530_v28 = vadd.f32 %v529_v3, %v528_v52  ;;  %v368_v32 = vadd.f32 %v367_v63, %v366_v45  ;;  %v380_v2 = vadd.f32 %v373_v0, %v361_v1 }
  0xe0   :  { %v381_v8 = vadd.f32 %v377_v26, %v368_v32  ;;  %v525_v9 = vadd.f32 %v524_v35, %v523_v27  ;;  %v531_v10 = vrot.slane %v530_v28, 1 }
  0xe2   :  { %v384_v11 = vcombine.low %v380_v2, %v381_v8  ;;  %v532_v41 = vadd.f32 %v531_v10, %v530_v28  ;;  %v533_v37 = vadd.f32 %v525_v9, %v373_v0 }
  0xe4   :  { %v391_v42 = vrot.slane %v384_v11, %v390_v5  ;;  %v534_v49 = vadd.f32 %v532_v41, %v377_v26 }
  0xe6   :  { %v398_v44 = vrot.slane %v391_v42, %v390_v5  ;;  %v537_v15 = vcombine.low %v533_v37, %v534_v49 }
  0xe8   :  { %404 = vst.msk [vmem:[#allocation3] ss:$2 sm:$0x3] %vm402_vm11, %v398_v44  ;;  %v544_v12 = vrot.slane %v537_v15, %v390_v5 }
  0xea   :  { %v551_v18 = vrot.slane %v544_v12, %v390_v5 }
  0xec   :  { %554 = vst.msk [vmem:[#allocation3 + $0x1] ss:$2 sm:$0x3] %vm402_vm11, %v551_v18 }
  0xed   :  { %609 = shalt.err (!%p606_p4)
}
  0xee   :  { %564 = dma.vmem_to_hbm [thread:$0]  %s562_s22, 64, %s943_s4, [#allocation4]  }
  0xef   :  { %618 = dma.done.wait [#allocation4], 64  }
  0xf0   :  { %619 = vsyncadd [#allocation4], 4294967232 }
  0xf1   :  { %568 = vsyncpa [#allocation4], 1 }

</bundles_post_ra>
